<compile_context>
chip_gen: v5e
topology: v5e:2x2
jax: 0.10.0
libtpu: 0.0.40
codegen_flags: <defaults>
</compile_context>

<pallas_src>
import functools
import math

import jax
import jax.numpy as jnp
from jax.experimental import pallas as pl
from jax.experimental.pallas import tpu as pltpu


def _int4_linear_kernel(xp_ref, qw_ref, scales_ref, zeros_ref, bias_ref, out_ref,
                        acc_ref, *, n_groups, reps):
    """One (m, n, k) grid step of the int4 matmul.

    xp_ref:     (8, tm, tkp)      activations, xp[i, m, p] = x[m, 8*p + i]
    qw_ref:     (tkp, tn)         packed int32 weights (8 nibbles per word along K)
    scales_ref: (n_groups, tn)    per-group scales (f32)
    zeros_ref:  (n_groups, tn)    per-group zero points (f32)
    bias_ref:   (1, tn)           bias (f32)
    out_ref:    (tm, tn)          output tile
    acc_ref:    (tm, tn) f32      VMEM accumulator scratch (persists across k)
    """
    k = pl.program_id(2)

    @pl.when(k == 0)
    def _init():
        acc_ref[...] = jnp.zeros_like(acc_ref)

    tkp, tn = qw_ref.shape
    _, tm, _ = xp_ref.shape

    qw = qw_ref[...]                                         # (tkp, tn) int32

    if n_groups == 1:
        s = scales_ref[...].astype(jnp.float32)              # (1, tn)
        z = zeros_ref[...].astype(jnp.float32)               # (1, tn)
        s_full = jnp.broadcast_to(s, (tkp, tn))              # hoisted sublane broadcast
        zs_row = z * s                                       # (1, tn)
        zs_full = None
    else:
        # Groups covered by this k tile (tkp packed rows == tkp // reps groups).
        g_tile = tkp // reps
        g0 = k * g_tile
        s_g = scales_ref[pl.ds(g0, g_tile), :].astype(jnp.float32)   # (g_tile, tn)
        z_g = zeros_ref[pl.ds(g0, g_tile), :].astype(jnp.float32)
        # Expand group-granular params to packed-row granularity with a one-hot matmul
        # E[p, g] = [p // reps == g]; avoids sublane repeat/reshape lowering issues.
        row_g = jax.lax.broadcasted_iota(jnp.int32, (tkp, g_tile), 0) // reps
        col_g = jax.lax.broadcasted_iota(jnp.int32, (tkp, g_tile), 1)
        expand = (row_g == col_g).astype(jnp.float32)                # (tkp, g_tile)
        s_full = jnp.dot(expand, s_g, preferred_element_type=jnp.float32)      # (tkp, tn)
        zs_full = jnp.dot(expand, z_g * s_g, preferred_element_type=jnp.float32)
        zs_row = None

    acc = acc_ref[...]
    xsum = jnp.zeros((tm, tkp), jnp.float32)

    # Unrolled loop over the 8 nibbles packed in each int32 word.  Weight row
    # 8*p + i of this K tile lives in nibble i of packed row p.
    for i in range(8):
        x_i = xp_ref[i]                                      # (tm, tkp)
        x_f32 = x_i.astype(jnp.float32)
        xsum = xsum + x_f32
        # Dequant math in f32 (v5e-safe VPU); bf16 only as the MXU operand.
        q_i = ((qw >> (4 * i)) & 0xF).astype(jnp.float32)    # (tkp, tn), codes in [0, 16)
        w_i = (q_i * s_full).astype(jnp.bfloat16)
        acc = acc + jnp.dot(x_f32.astype(jnp.bfloat16), w_i,
                            preferred_element_type=jnp.float32)

    # Factored zero-point correction:  sum_k x[m,k] * z[g(k),n] * s[g(k),n]
    if n_groups == 1:
        acc = acc - jnp.sum(xsum, axis=1, keepdims=True) * zs_row        # rank-1
    else:
        acc = acc - jnp.dot(xsum, zs_full, preferred_element_type=jnp.float32)

    acc_ref[...] = acc

    @pl.when(k == pl.num_programs(2) - 1)
    def _finalize():
        out_ref[...] = (acc_ref[...] + bias_ref[...]).astype(out_ref.dtype)


def _choose_tile(dim, target, align):
    """Largest multiple of `align` that divides `dim` and is <= target, else the full dim."""
    if dim <= target:
        return dim
    t = (target // align) * align
    while t >= align:
        if dim % t == 0:
            return t
        t -= align
    return dim


def linear_int4(x, q_weights, scales, zeros, bias=None, group_size=-1,
                *, tm=256, tn=512, tkp=256):
    """Pallas equivalent of Linear_Int4.forward.

    x:         (B, S, K) or (S, K)
    q_weights: (K // 8, N) int32, packed int4 (8 codes per word along the K axis)
    scales:    (N,) or (n_groups, N)
    zeros:     (N,) or (n_groups, N)
    bias:      (N,) or None
    """
    orig_ndim = x.ndim
    x3 = x[None] if orig_ndim == 2 else x
    B, S, K = x3.shape
    Kp, N = q_weights.shape
    assert K == Kp * 8, "in_features must equal 8 * packed rows for 4-bit packing"
    M = B * S

    # Group-granular scales / zeros (no (Kp, N) expansion on the host).
    if group_size in (None, -1):
        n_groups = 1
    else:
        assert group_size % 8 == 0, "group_size must be a multiple of 8 (packing granularity)"
        n_groups = -(-K // group_size)
    if n_groups == 1:
        reps = Kp  # unused by the single-group kernel path
        align_k = 128
    else:
        # TODO(synk): ragged last quantization group (K % group_size != 0) not supported.
        assert K % group_size == 0, "K must be a multiple of group_size"
        reps = group_size // 8
        align_k = (128 * reps) // math.gcd(128, reps)  # k tiles must not split a group
    sc = scales.reshape(n_groups, N).astype(jnp.float32)
    zp = zeros.reshape(n_groups, N).astype(jnp.float32)
    bias_arr = jnp.zeros((N,), jnp.float32) if bias is None else bias.astype(jnp.float32)
    bias2 = bias_arr.reshape(1, N)

    # Tile sizes: aligned divisors (or the full dim) so BlockSpecs satisfy (8, 128) rules.
    tm_eff = _choose_tile(M, tm, 8)
    tn_eff = _choose_tile(N, tn, 128)
    tkp_eff = _choose_tile(Kp, max(tkp, align_k), align_k)

    x2 = x3.reshape(M, K)
    # Permute activations so nibble i of packed row p lines up with xp[i, :, p].
    xp = x2.reshape(M, Kp, 8).transpose(2, 0, 1)  # (8, M, Kp)

    kernel = functools.partial(_int4_linear_kernel, n_groups=n_groups, reps=reps)

    out2 = pl.pallas_call(
        kernel,
        out_shape=jax.ShapeDtypeStruct((M, N), x.dtype),
        grid=(M // tm_eff, N // tn_eff, Kp // tkp_eff),
        in_specs=[
            pl.BlockSpec((8, tm_eff, tkp_eff), lambda m, n, k: (0, m, k)),
            pl.BlockSpec((tkp_eff, tn_eff), lambda m, n, k: (k, n)),
            pl.BlockSpec((n_groups, tn_eff), lambda m, n, k: (0, n)),
            pl.BlockSpec((n_groups, tn_eff), lambda m, n, k: (0, n)),
            pl.BlockSpec((1, tn_eff), lambda m, n, k: (0, n)),
        ],
        out_specs=pl.BlockSpec((tm_eff, tn_eff), lambda m, n, k: (m, n)),
        scratch_shapes=[pltpu.VMEM((tm_eff, tn_eff), jnp.float32)],
        compiler_params=pltpu.CompilerParams(
            dimension_semantics=("parallel", "parallel", "arbitrary"),
            vmem_limit_bytes=48 * 1024 * 1024,
        ),
    )(xp, q_weights, sc, zp, bias2)

    out = out2.reshape(B, S, N)
    if orig_ndim == 2:
        out = out.reshape(S, N)
    return out


# ----------------------------------------------------------------------------------
# Test helpers
# ----------------------------------------------------------------------------------
def _make_params(key, in_features, out_features, n_groups=1):
    """Deterministic synthetic parameters matching Linear_Int4 buffer shapes."""
    k1, k2, k3, k4 = jax.random.split(key, 4)
    assert in_features % 8 == 0
    Kp = in_features // 8

    q_codes = jax.random.randint(k1, (in_features, out_features), 0, 16, dtype=jnp.int32)
    q_u = q_codes.astype(jnp.uint32).reshape(Kp, 8, out_features)
    shifts = (jnp.arange(8, dtype=jnp.uint32) * 4)[None, :, None]
    packed_u32 = jnp.sum(q_u << shifts, axis=1, dtype=jnp.uint32)
    packed_i32 = jax.lax.bitcast_convert_type(packed_u32, jnp.int32)  # (Kp, N) int32

    qshape = (out_features,) if n_groups == 1 else (n_groups, out_features)
    scales = (jax.random.uniform(k2, qshape) * 0.1 + 0.05).astype(jnp.float16)
    zeros = (jax.random.uniform(k3, qshape) * 15.0).astype(jnp.float16)
    bias = (jax.random.normal(k4, (out_features,)) * 0.1).astype(jnp.float16)
    return q_codes, packed_i32, scales, zeros, bias


def _reference(x, q_codes, scales, zeros, bias, group_size=-1):
    K, N = q_codes.shape
    if group_size in (None, -1):
        s = jnp.broadcast_to(scales.astype(jnp.float32).reshape(1, N), (K, N))
        z = jnp.broadcast_to(zeros.astype(jnp.float32).reshape(1, N), (K, N))
    else:
        s = jnp.repeat(scales.astype(jnp.float32), group_size, axis=0)[:K]
        z = jnp.repeat(zeros.astype(jnp.float32), group_size, axis=0)[:K]
    w = (q_codes.astype(jnp.float32) - z) * s
    y = jnp.einsum("bsk,kn->bsn", x.astype(jnp.float32), w)
    if bias is not None:
        y = y + bias.astype(jnp.float32)
    return y.astype(x.dtype)


def _assert_close(out, ref, rel=2e-2, abs_=2e-2, name=""):
    out32 = out.astype(jnp.float32)
    ref32 = ref.astype(jnp.float32)
    err = float(jnp.max(jnp.abs(out32 - ref32)))
    lim = rel * float(jnp.max(jnp.abs(ref32))) + abs_
    assert err <= lim, f"{name}: max err {err} > {lim}"


if __name__ == "__main__":
    key = jax.random.PRNGKey(0)
    k_params, k_x, k_params_g, k_x_g = jax.random.split(key, 4)

    # ---- single-group path (group_size = -1), 3-D and 2-D inputs --------------------
    in_features, out_features = 32, 64
    B, S = 2, 8
    q_codes, packed_i32, scales, zeros, bias = _make_params(k_params, in_features, out_features)
    x = jax.random.normal(k_x, (B, S, in_features), dtype=jnp.float32)

    out = linear_int4(x, packed_i32, scales, zeros, bias, group_size=-1)
    out = jax.block_until_ready(out)
    ref = _reference(x, q_codes, scales, zeros, bias, group_size=-1)
    assert out.shape == (B, S, out_features)
    _assert_close(out, ref, name="3d/group=-1")

    out2d = linear_int4(x[0], packed_i32, scales, zeros, bias, group_size=-1)
    out2d = jax.block_until_ready(out2d)
    assert out2d.shape == (S, out_features)
    _assert_close(out2d, ref[0], name="2d/group=-1")

    # ---- grouped path ---------------------------------------------------------------
    in_g, out_g, group_size = 64, 128, 16
    n_groups = in_g // group_size
    q_codes_g, packed_g, scales_g, zeros_g, bias_g = _make_params(
        k_params_g, in_g, out_g, n_groups=n_groups)
    xg = jax.random.normal(k_x_g, (1, 8, in_g), dtype=jnp.float32)

    out_grp = linear_int4(xg, packed_g, scales_g, zeros_g, bias_g, group_size=group_size)
    out_grp = jax.block_until_ready(out_grp)
    ref_grp = _reference(xg, q_codes_g, scales_g, zeros_g, bias_g, group_size=group_size)
    assert out_grp.shape == (1, 8, out_g)
    _assert_close(out_grp, ref_grp, name="3d/grouped")

    print("KERNEL_OK")
</pallas_src>

<mosaic_0001>
module attributes {stable_mosaic.version = 11 : i64} {
  func.func @_int4_linear_kernel(%arg0: i32, %arg1: i32, %arg2: i32, %arg3: memref<8x16x4xf32, #tpu.memory_space<vmem>>, %arg4: memref<4x64xi32, #tpu.memory_space<vmem>>, %arg5: memref<1x64xf32, #tpu.memory_space<vmem>>, %arg6: memref<1x64xf32, #tpu.memory_space<vmem>>, %arg7: memref<1x64xf32, #tpu.memory_space<vmem>>, %arg8: memref<16x64xf32, #tpu.memory_space<vmem>>, %arg9: memref<16x64xf32, #tpu.memory_space<vmem>>) attributes {dimension_semantics = [#tpu.dimension_semantics<parallel>, #tpu.dimension_semantics<parallel>, #tpu.dimension_semantics<arbitrary>], iteration_bounds = array<i64: 1, 1, 1>, scalar_prefetch = 0 : i64, scratch_operands = 1 : i64, tpu.core_type = #tpu.core_type<tc>, window_params = [{transform_indices = @transform_0, window_bounds = array<i64: 8, 16, 4>}, {transform_indices = @transform_1, window_bounds = array<i64: 4, 64>}, {transform_indices = @transform_2, window_bounds = array<i64: 1, 64>}, {transform_indices = @transform_3, window_bounds = array<i64: 1, 64>}, {transform_indices = @transform_4, window_bounds = array<i64: 1, 64>}, {transform_indices = @transform_5, window_bounds = array<i64: 16, 64>}]} {
    %c0_i32 = arith.constant 0 : i32
    %0 = arith.cmpi eq, %arg2, %c0_i32 : i32
    %1 = arith.extui %0 : i1 to i32
    %c0_i32_0 = arith.constant 0 : i32
    %2 = arith.cmpi ne, %1, %c0_i32_0 : i32
    scf.if %2 {
      %cst_46 = arith.constant 0.000000e+00 : f32
      %125 = vector.broadcast %cst_46 : f32 to vector<16x64xf32>
      %c0_47 = arith.constant 0 : index
      %c0_48 = arith.constant 0 : index
      %126 = vector.load %arg9[%c0_47, %c0_48] : memref<16x64xf32, #tpu.memory_space<vmem>>, vector<16x64xf32>
      tpu.vector_store %arg9[%c0_47, %c0_48], %125 {strides = array<i32>} : memref<16x64xf32, #tpu.memory_space<vmem>>, vector<16x64xf32>,
    } else {
    }
    %c0 = arith.constant 0 : index
    %c0_1 = arith.constant 0 : index
    %3 = vector.load %arg4[%c0, %c0_1] : memref<4x64xi32, #tpu.memory_space<vmem>>, vector<4x64xi32>
    %c0_2 = arith.constant 0 : index
    %c0_3 = arith.constant 0 : index
    %4 = vector.load %arg5[%c0_2, %c0_3] : memref<1x64xf32, #tpu.memory_space<vmem>>, vector<1x64xf32>
    %c0_4 = arith.constant 0 : index
    %c0_5 = arith.constant 0 : index
    %5 = vector.load %arg6[%c0_4, %c0_5] : memref<1x64xf32, #tpu.memory_space<vmem>>, vector<1x64xf32>
    %6 = vector.shape_cast %4 : vector<1x64xf32> to vector<1x64xf32>
    %7 = vector.broadcast %6 : vector<1x64xf32> to vector<4x64xf32>
    %8 = arith.mulf %5, %4 : vector<1x64xf32>
    %c0_6 = arith.constant 0 : index
    %c0_7 = arith.constant 0 : index
    %9 = vector.load %arg9[%c0_6, %c0_7] : memref<16x64xf32, #tpu.memory_space<vmem>>, vector<16x64xf32>
    %cst = arith.constant 0.000000e+00 : f32
    %10 = vector.broadcast %cst : f32 to vector<16x4xf32>
    %c0_8 = arith.constant 0 : index
    %c0_9 = arith.constant 0 : index
    %c0_10 = arith.constant 0 : index
    %11 = vector.load %arg3[%c0_8, %c0_9, %c0_10] : memref<8x16x4xf32, #tpu.memory_space<vmem>>, vector<1x16x4xf32>
    %12 = vector.shape_cast %11 : vector<1x16x4xf32> to vector<16x4xf32>
    %13 = arith.addf %10, %12 : vector<16x4xf32>
    %c0_i32_11 = arith.constant 0 : i32
    %14 = vector.broadcast %c0_i32_11 : i32 to vector<4x64xi32>
    %15 = arith.shrsi %3, %14 : vector<4x64xi32>
    %c15_i32 = arith.constant 15 : i32
    %16 = vector.broadcast %c15_i32 : i32 to vector<4x64xi32>
    %17 = arith.andi %15, %16 : vector<4x64xi32>
    %18 = arith.sitofp %17 : vector<4x64xi32> to vector<4x64xf32>
    %19 = arith.mulf %18, %7 : vector<4x64xf32>
    %20 = arith.truncf %19 : vector<4x64xf32> to vector<4x64xbf16>
    %21 = arith.truncf %12 : vector<16x4xf32> to vector<16x4xbf16>
    %cst_12 = arith.constant dense<0.000000e+00> : vector<16x64xf32>
    %22 = tpu.matmul %21, %20, %cst_12 {dimension_numbers = #tpu.dot_dimension_numbers<[1], [0], [0], [1], [0, 0, 1, 1], [], []>} : vector<16x4xbf16>, vector<4x64xbf16>, vector<16x64xf32> -> vector<16x64xf32>
    %23 = arith.addf %9, %22 : vector<16x64xf32>
    %c1 = arith.constant 1 : index
    %c0_13 = arith.constant 0 : index
    %c0_14 = arith.constant 0 : index
    %24 = vector.load %arg3[%c1, %c0_13, %c0_14] : memref<8x16x4xf32, #tpu.memory_space<vmem>>, vector<1x16x4xf32>
    %25 = vector.shape_cast %24 : vector<1x16x4xf32> to vector<16x4xf32>
    %26 = arith.addf %13, %25 : vector<16x4xf32>
    %c4_i32 = arith.constant 4 : i32
    %27 = vector.broadcast %c4_i32 : i32 to vector<4x64xi32>
    %28 = arith.shrsi %3, %27 : vector<4x64xi32>
    %c15_i32_15 = arith.constant 15 : i32
    %29 = vector.broadcast %c15_i32_15 : i32 to vector<4x64xi32>
    %30 = arith.andi %28, %29 : vector<4x64xi32>
    %31 = arith.sitofp %30 : vector<4x64xi32> to vector<4x64xf32>
    %32 = arith.mulf %31, %7 : vector<4x64xf32>
    %33 = arith.truncf %32 : vector<4x64xf32> to vector<4x64xbf16>
    %34 = arith.truncf %25 : vector<16x4xf32> to vector<16x4xbf16>
    %cst_16 = arith.constant dense<0.000000e+00> : vector<16x64xf32>
    %35 = tpu.matmul %34, %33, %cst_16 {dimension_numbers = #tpu.dot_dimension_numbers<[1], [0], [0], [1], [0, 0, 1, 1], [], []>} : vector<16x4xbf16>, vector<4x64xbf16>, vector<16x64xf32> -> vector<16x64xf32>
    %36 = arith.addf %23, %35 : vector<16x64xf32>
    %c2 = arith.constant 2 : index
    %c0_17 = arith.constant 0 : index
    %c0_18 = arith.constant 0 : index
    %37 = vector.load %arg3[%c2, %c0_17, %c0_18] : memref<8x16x4xf32, #tpu.memory_space<vmem>>, vector<1x16x4xf32>
    %38 = vector.shape_cast %37 : vector<1x16x4xf32> to vector<16x4xf32>
    %39 = arith.addf %26, %38 : vector<16x4xf32>
    %c8_i32 = arith.constant 8 : i32
    %40 = vector.broadcast %c8_i32 : i32 to vector<4x64xi32>
    %41 = arith.shrsi %3, %40 : vector<4x64xi32>
    %c15_i32_19 = arith.constant 15 : i32
    %42 = vector.broadcast %c15_i32_19 : i32 to vector<4x64xi32>
    %43 = arith.andi %41, %42 : vector<4x64xi32>
    %44 = arith.sitofp %43 : vector<4x64xi32> to vector<4x64xf32>
    %45 = arith.mulf %44, %7 : vector<4x64xf32>
    %46 = arith.truncf %45 : vector<4x64xf32> to vector<4x64xbf16>
    %47 = arith.truncf %38 : vector<16x4xf32> to vector<16x4xbf16>
    %cst_20 = arith.constant dense<0.000000e+00> : vector<16x64xf32>
    %48 = tpu.matmul %47, %46, %cst_20 {dimension_numbers = #tpu.dot_dimension_numbers<[1], [0], [0], [1], [0, 0, 1, 1], [], []>} : vector<16x4xbf16>, vector<4x64xbf16>, vector<16x64xf32> -> vector<16x64xf32>
    %49 = arith.addf %36, %48 : vector<16x64xf32>
    %c3 = arith.constant 3 : index
    %c0_21 = arith.constant 0 : index
    %c0_22 = arith.constant 0 : index
    %50 = vector.load %arg3[%c3, %c0_21, %c0_22] : memref<8x16x4xf32, #tpu.memory_space<vmem>>, vector<1x16x4xf32>
    %51 = vector.shape_cast %50 : vector<1x16x4xf32> to vector<16x4xf32>
    %52 = arith.addf %39, %51 : vector<16x4xf32>
    %c12_i32 = arith.constant 12 : i32
    %53 = vector.broadcast %c12_i32 : i32 to vector<4x64xi32>
    %54 = arith.shrsi %3, %53 : vector<4x64xi32>
    %c15_i32_23 = arith.constant 15 : i32
    %55 = vector.broadcast %c15_i32_23 : i32 to vector<4x64xi32>
    %56 = arith.andi %54, %55 : vector<4x64xi32>
    %57 = arith.sitofp %56 : vector<4x64xi32> to vector<4x64xf32>
    %58 = arith.mulf %57, %7 : vector<4x64xf32>
    %59 = arith.truncf %58 : vector<4x64xf32> to vector<4x64xbf16>
    %60 = arith.truncf %51 : vector<16x4xf32> to vector<16x4xbf16>
    %cst_24 = arith.constant dense<0.000000e+00> : vector<16x64xf32>
    %61 = tpu.matmul %60, %59, %cst_24 {dimension_numbers = #tpu.dot_dimension_numbers<[1], [0], [0], [1], [0, 0, 1, 1], [], []>} : vector<16x4xbf16>, vector<4x64xbf16>, vector<16x64xf32> -> vector<16x64xf32>
    %62 = arith.addf %49, %61 : vector<16x64xf32>
    %c4 = arith.constant 4 : index
    %c0_25 = arith.constant 0 : index
    %c0_26 = arith.constant 0 : index
    %63 = vector.load %arg3[%c4, %c0_25, %c0_26] : memref<8x16x4xf32, #tpu.memory_space<vmem>>, vector<1x16x4xf32>
    %64 = vector.shape_cast %63 : vector<1x16x4xf32> to vector<16x4xf32>
    %65 = arith.addf %52, %64 : vector<16x4xf32>
    %c16_i32 = arith.constant 16 : i32
    %66 = vector.broadcast %c16_i32 : i32 to vector<4x64xi32>
    %67 = arith.shrsi %3, %66 : vector<4x64xi32>
    %c15_i32_27 = arith.constant 15 : i32
    %68 = vector.broadcast %c15_i32_27 : i32 to vector<4x64xi32>
    %69 = arith.andi %67, %68 : vector<4x64xi32>
    %70 = arith.sitofp %69 : vector<4x64xi32> to vector<4x64xf32>
    %71 = arith.mulf %70, %7 : vector<4x64xf32>
    %72 = arith.truncf %71 : vector<4x64xf32> to vector<4x64xbf16>
    %73 = arith.truncf %64 : vector<16x4xf32> to vector<16x4xbf16>
    %cst_28 = arith.constant dense<0.000000e+00> : vector<16x64xf32>
    %74 = tpu.matmul %73, %72, %cst_28 {dimension_numbers = #tpu.dot_dimension_numbers<[1], [0], [0], [1], [0, 0, 1, 1], [], []>} : vector<16x4xbf16>, vector<4x64xbf16>, vector<16x64xf32> -> vector<16x64xf32>
    %75 = arith.addf %62, %74 : vector<16x64xf32>
    %c5 = arith.constant 5 : index
    %c0_29 = arith.constant 0 : index
    %c0_30 = arith.constant 0 : index
    %76 = vector.load %arg3[%c5, %c0_29, %c0_30] : memref<8x16x4xf32, #tpu.memory_space<vmem>>, vector<1x16x4xf32>
    %77 = vector.shape_cast %76 : vector<1x16x4xf32> to vector<16x4xf32>
    %78 = arith.addf %65, %77 : vector<16x4xf32>
    %c20_i32 = arith.constant 20 : i32
    %79 = vector.broadcast %c20_i32 : i32 to vector<4x64xi32>
    %80 = arith.shrsi %3, %79 : vector<4x64xi32>
    %c15_i32_31 = arith.constant 15 : i32
    %81 = vector.broadcast %c15_i32_31 : i32 to vector<4x64xi32>
    %82 = arith.andi %80, %81 : vector<4x64xi32>
    %83 = arith.sitofp %82 : vector<4x64xi32> to vector<4x64xf32>
    %84 = arith.mulf %83, %7 : vector<4x64xf32>
    %85 = arith.truncf %84 : vector<4x64xf32> to vector<4x64xbf16>
    %86 = arith.truncf %77 : vector<16x4xf32> to vector<16x4xbf16>
    %cst_32 = arith.constant dense<0.000000e+00> : vector<16x64xf32>
    %87 = tpu.matmul %86, %85, %cst_32 {dimension_numbers = #tpu.dot_dimension_numbers<[1], [0], [0], [1], [0, 0, 1, 1], [], []>} : vector<16x4xbf16>, vector<4x64xbf16>, vector<16x64xf32> -> vector<16x64xf32>
    %88 = arith.addf %75, %87 : vector<16x64xf32>
    %c6 = arith.constant 6 : index
    %c0_33 = arith.constant 0 : index
    %c0_34 = arith.constant 0 : index
    %89 = vector.load %arg3[%c6, %c0_33, %c0_34] : memref<8x16x4xf32, #tpu.memory_space<vmem>>, vector<1x16x4xf32>
    %90 = vector.shape_cast %89 : vector<1x16x4xf32> to vector<16x4xf32>
    %91 = arith.addf %78, %90 : vector<16x4xf32>
    %c24_i32 = arith.constant 24 : i32
    %92 = vector.broadcast %c24_i32 : i32 to vector<4x64xi32>
    %93 = arith.shrsi %3, %92 : vector<4x64xi32>
    %c15_i32_35 = arith.constant 15 : i32
    %94 = vector.broadcast %c15_i32_35 : i32 to vector<4x64xi32>
    %95 = arith.andi %93, %94 : vector<4x64xi32>
    %96 = arith.sitofp %95 : vector<4x64xi32> to vector<4x64xf32>
    %97 = arith.mulf %96, %7 : vector<4x64xf32>
    %98 = arith.truncf %97 : vector<4x64xf32> to vector<4x64xbf16>
    %99 = arith.truncf %90 : vector<16x4xf32> to vector<16x4xbf16>
    %cst_36 = arith.constant dense<0.000000e+00> : vector<16x64xf32>
    %100 = tpu.matmul %99, %98, %cst_36 {dimension_numbers = #tpu.dot_dimension_numbers<[1], [0], [0], [1], [0, 0, 1, 1], [], []>} : vector<16x4xbf16>, vector<4x64xbf16>, vector<16x64xf32> -> vector<16x64xf32>
    %101 = arith.addf %88, %100 : vector<16x64xf32>
    %c7 = arith.constant 7 : index
    %c0_37 = arith.constant 0 : index
    %c0_38 = arith.constant 0 : index
    %102 = vector.load %arg3[%c7, %c0_37, %c0_38] : memref<8x16x4xf32, #tpu.memory_space<vmem>>, vector<1x16x4xf32>
    %103 = vector.shape_cast %102 : vector<1x16x4xf32> to vector<16x4xf32>
    %104 = arith.addf %91, %103 : vector<16x4xf32>
    %c28_i32 = arith.constant 28 : i32
    %105 = vector.broadcast %c28_i32 : i32 to vector<4x64xi32>
    %106 = arith.shrsi %3, %105 : vector<4x64xi32>
    %c15_i32_39 = arith.constant 15 : i32
    %107 = vector.broadcast %c15_i32_39 : i32 to vector<4x64xi32>
    %108 = arith.andi %106, %107 : vector<4x64xi32>
    %109 = arith.sitofp %108 : vector<4x64xi32> to vector<4x64xf32>
    %110 = arith.mulf %109, %7 : vector<4x64xf32>
    %111 = arith.truncf %110 : vector<4x64xf32> to vector<4x64xbf16>
    %112 = arith.truncf %103 : vector<16x4xf32> to vector<16x4xbf16>
    %cst_40 = arith.constant dense<0.000000e+00> : vector<16x64xf32>
    %113 = tpu.matmul %112, %111, %cst_40 {dimension_numbers = #tpu.dot_dimension_numbers<[1], [0], [0], [1], [0, 0, 1, 1], [], []>} : vector<16x4xbf16>, vector<4x64xbf16>, vector<16x64xf32> -> vector<16x64xf32>
    %114 = arith.addf %101, %113 : vector<16x64xf32>
    %cst_41 = arith.constant dense<0.000000e+00> : vector<16xf32>
    %115 = vector.multi_reduction <add>, %104, %cst_41 [1] : vector<16x4xf32> to vector<16xf32>
    %116 = vector.shape_cast %115 : vector<16xf32> to vector<16x1xf32>
    %117 = vector.broadcast %116 : vector<16x1xf32> to vector<16x64xf32>
    %118 = vector.broadcast %8 : vector<1x64xf32> to vector<16x64xf32>
    %119 = arith.mulf %117, %118 : vector<16x64xf32>
    %120 = arith.subf %114, %119 : vector<16x64xf32>
    %c0_42 = arith.constant 0 : index
    %c0_43 = arith.constant 0 : index
    %121 = vector.load %arg9[%c0_42, %c0_43] : memref<16x64xf32, #tpu.memory_space<vmem>>, vector<16x64xf32>
    tpu.vector_store %arg9[%c0_42, %c0_43], %120 {strides = array<i32>} : memref<16x64xf32, #tpu.memory_space<vmem>>, vector<16x64xf32>,
    %c0_i32_44 = arith.constant 0 : i32
    %122 = arith.cmpi eq, %arg2, %c0_i32_44 : i32
    %123 = arith.extui %122 : i1 to i32
    %c0_i32_45 = arith.constant 0 : i32
    %124 = arith.cmpi ne, %123, %c0_i32_45 : i32
    scf.if %124 {
      %c0_46 = arith.constant 0 : index
      %c0_47 = arith.constant 0 : index
      %125 = vector.load %arg9[%c0_46, %c0_47] : memref<16x64xf32, #tpu.memory_space<vmem>>, vector<16x64xf32>
      %c0_48 = arith.constant 0 : index
      %c0_49 = arith.constant 0 : index
      %126 = vector.load %arg7[%c0_48, %c0_49] : memref<1x64xf32, #tpu.memory_space<vmem>>, vector<1x64xf32>
      %127 = vector.broadcast %126 : vector<1x64xf32> to vector<16x64xf32>
      %128 = arith.addf %125, %127 : vector<16x64xf32>
      %c0_50 = arith.constant 0 : index
      %c0_51 = arith.constant 0 : index
      %129 = vector.load %arg8[%c0_50, %c0_51] : memref<16x64xf32, #tpu.memory_space<vmem>>, vector<16x64xf32>
      tpu.vector_store %arg8[%c0_50, %c0_51], %128 {strides = array<i32>} : memref<16x64xf32, #tpu.memory_space<vmem>>, vector<16x64xf32>,
    } else {
    }
    return
  }
  func.func @transform_0(%arg0: i32, %arg1: i32, %arg2: i32) -> (i32, i32, i32) {
    %c0_i32 = arith.constant 0 : i32
    %c0_i32_0 = arith.constant 0 : i32
    return %c0_i32, %arg0, %arg2 : i32, i32, i32
  }
  func.func @transform_1(%arg0: i32, %arg1: i32, %arg2: i32) -> (i32, i32) {
    %c0_i32 = arith.constant 0 : i32
    return %arg2, %arg1 : i32, i32
  }
  func.func @transform_2(%arg0: i32, %arg1: i32, %arg2: i32) -> (i32, i32) {
    %c0_i32 = arith.constant 0 : i32
    %c0_i32_0 = arith.constant 0 : i32
    return %c0_i32, %arg1 : i32, i32
  }
  func.func @transform_3(%arg0: i32, %arg1: i32, %arg2: i32) -> (i32, i32) {
    %c0_i32 = arith.constant 0 : i32
    %c0_i32_0 = arith.constant 0 : i32
    return %c0_i32, %arg1 : i32, i32
  }
  func.func @transform_4(%arg0: i32, %arg1: i32, %arg2: i32) -> (i32, i32) {
    %c0_i32 = arith.constant 0 : i32
    %c0_i32_0 = arith.constant 0 : i32
    return %c0_i32, %arg1 : i32, i32
  }
  func.func @transform_5(%arg0: i32, %arg1: i32, %arg2: i32) -> (i32, i32) {
    %c0_i32 = arith.constant 0 : i32
    return %arg0, %arg1 : i32, i32
  }
}

</mosaic_0001>

<bundles_post_ra>
// kernel: tpu_custom_call.1
= control target key start
LH: loop header
LB: loop body
LE: loop exit
PB: predicated region body
PF: predicated region fallthrough
CT: control target
= control target key end

     0   :  { %vm51_vm0 = vcmask 1041408   ;;  %vm47_vm1 = vcmask 31744   ;;  %s548_s0 = inlined_call_operand.vmem [shape: f32[8,16,4], index: 0, kind: input, shape index: {}]   ;;  %s549_s1 = inlined_call_operand.vmem [shape: s32[4,64], index: 1, kind: input, shape index: {}]   ;;  %s550_s2 = inlined_call_operand.vmem [shape: f32[1,64], index: 2, kind: input, shape index: {}]   ;;  %s551_s3 = inlined_call_operand.vmem [shape: f32[1,64], index: 3, kind: input, shape index: {}]   ;;  %s552_s4 = inlined_call_operand.vmem [shape: f32[1,64], index: 4, kind: input, shape index: {}]   ;;  %s553_s5 = inlined_call_operand.hbm [shape: f32[16,64], index: 5, kind: output, shape index: {}]  }
   0x1   :  { %v441_v0 = vld [vmem:[%s549_s1] sm:$0xf]  ;;  %v39_v6 = vld [vmem:[%s548_s0 + $0x8] sm:$0xff]  ;;  %v350_v8 = vld [vmem:[%s548_s0 + $0x10] sm:$0xff] }
   0x2   :  { %v446_v1 = vld [vmem:[%s550_s2] ss:$0 sm:$0xff]  ;;  %v42_v2 = vand.u32 15, %v441_v0  ;;  %v76_v3 = vshra.s32 %v441_v0, 4  ;;  %v109_v4 = vshra.s32 %v441_v0, 8  ;;  %v142_v7 = vshra.s32 %v441_v0, 12 }
   0x3   :  { %v38_v5 = vld [vmem:[%s548_s0] sm:$0xff]  ;;  %v351_v9 = vld [vmem:[%s548_s0 + $0x18] sm:$0xff]  ;;  %v241_v10 = vshra.s32 %v441_v0, 24  ;;  %v354_v19 = vld [vmem:[%s548_s0 + $0x28] sm:$0xff] }
   0x4   :  { %v43_v11 = vcvt.s32.f32 %v42_v2  ;;  %v77_v12 = vand.u32 15, %v76_v3  ;;  %v110_v13 = vand.u32 15, %v109_v4  ;;  %v74_v14 = vadd.f32 %v350_v8, %v38_v5  ;;  %v353_v18 = vld [vmem:[%s548_s0 + $0x20] sm:$0xff] }
   0x5   :  { %v143_v15 = vand.u32 15, %v142_v7  ;;  %v46_v16 = vpack.c.bf16 %v39_v6, %v38_v5  ;;  %v75_v17 = vadd.f32 %v351_v9, %v39_v6  ;;  %v81_v23 = vpack.c.bf16 %v351_v9, %v350_v8 }
   0x6   :  { %v44_v20 = vmul.f32 %v446_v1, %v43_v11  ;;  %v78_v21 = vcvt.s32.f32 %v77_v12  ;;  %v111_v22 = vcvt.s32.f32 %v110_v13  ;;  %v107_v25 = vadd.f32 %v353_v18, %v74_v14 }
   0x7   :  { %v144_v24 = vcvt.s32.f32 %v143_v15  ;;  %v108_v26 = vadd.f32 %v354_v19, %v75_v17  ;;  %v242_v27 = vand.u32 15, %v241_v10 }
   0x8   :  { %10 = vsyncpa [#allocation4], 0  ;;  %v45_v28 = vpack.c.bf16 %v44_v20, %v44_v20  ;;  %v79_v29 = vmul.f32 %v446_v1, %v78_v21  ;;  %v112_v30 = vmul.f32 %v446_v1, %v111_v22  ;;  %v114_v31 = vpack.c.bf16 %v354_v19, %v353_v18  ;;  %v357_v32 = vld [vmem:[%s548_s0 + $0x38] sm:$0xff]  ;;  %v356_v40 = vld [vmem:[%s548_s0 + $0x30] sm:$0xff]  ;;  %s405_s30 = smov [#allocation3]   ;;  %s337_s9 = sshll.u32 %s553_s5, 4  ;;  %s338_s9 = int_to_ptr.hbm [resolvable:$true] %s337_s9 }
   0x9   :  { %v145_v33 = vmul.f32 %v446_v1, %v144_v24  ;;  %v141_v34 = vadd.f32 %v357_v32, %v108_v26  ;;  %v243_v35 = vcvt.s32.f32 %v242_v27  ;;  %v175_v36 = vshra.s32 %v441_v0, 16  ;;  %v360_v52 = vld [vmem:[%s548_s0 + $0x48] sm:$0xff]  ;;  %v359_v58 = vld [vmem:[%s548_s0 + $0x40] sm:$0xff]  ;;  %v363_v3 = vld [vmem:[%s548_s0 + $0x58] sm:$0xff]  ;;  %s335_s6 = sshll.u32 %s405_s30, 4  ;;  %s407_s10 = smov 8   ;;  %s336_s6 = int_to_ptr.vmem [resolvable:$true] %s335_s6 }
   0xa   :  { %v53_v37 = vsel %vm51_vm0, %v45_v28, 0  ;;  %v80_v38 = vpack.c.bf16 %v79_v29, %v79_v29  ;;  %v113_v39 = vpack.c.bf16 %v112_v30, %v112_v30  ;;  %v370_v41 = vshrl.u32 %v441_v0, 28  ;;  %v365_v7 = vld [vmem:[%s548_s0 + $0x60] sm:$0xff]  ;;  %v366_v13 = vld [vmem:[%s548_s0 + $0x68] sm:$0xff]  ;;  %v369_v18 = vld [vmem:[%s548_s0 + $0x78] sm:$0xff] }
   0xb   :  { %62 = vmatpush.bf16.msra.mxu0 %v53_v37  ;;  %v146_v42 = vpack.c.bf16 %v145_v33, %v145_v33  ;;  %v140_v43 = vadd.f32 %v356_v40, %v107_v25  ;;  %v244_v44 = vmul.f32 %v446_v1, %v243_v35  ;;  %v176_v45 = vand.u32 15, %v175_v36  ;;  %v30_v36 = vld [vmem:[%s550_s2] sm:$0x1] }
   0xc   :  { %v86_v46 = vsel %vm51_vm0, %v80_v38, 0  ;;  %v119_v47 = vsel %vm51_vm0, %v113_v39, 0  ;;  %v276_v48 = vcvt.s32.f32 %v370_v41  ;;  %v208_v49 = vshra.s32 %v441_v0, 20  ;;  %v362_v0 = vld [vmem:[%s548_s0 + $0x50] sm:$0xff]  ;;  %v31_v37 = vld [vmem:[%s551_s3] sm:$0x1] }
   0xd   :  { %95 = vmatpush.bf16.msra.mxu1 %v86_v46  ;;  %128 = vmatpush.bf16.msra.mxu2 %v119_v47  ;;  %v152_v50 = vsel %vm51_vm0, %v146_v42, 0  ;;  %v147_v51 = vpack.c.bf16 %v357_v32, %v356_v40  ;;  %v245_v53 = vpack.c.bf16 %v244_v44, %v244_v44  ;;  %v177_v54 = vcvt.s32.f32 %v176_v45 }
   0xe   :  { %161 = vmatpush.bf16.msra.mxu3 %v152_v50  ;;  %349 = vmatmul.msk.bf16.vlgmr.msra.gmra.mxu0 %vm47_vm1, %v46_v16  ;;  %v174_v55 = vadd.f32 %v360_v52, %v141_v34  ;;  %v277_v56 = vmul.f32 %v446_v1, %v276_v48  ;;  %v209_v57 = vand.u32 15, %v208_v49  ;;  %v173_v61 = vadd.f32 %v359_v58, %v140_v43 }
   0xf   :  { %v251_v59 = vsel %vm51_vm0, %v245_v53, 0  ;;  %v178_v60 = vmul.f32 %v446_v1, %v177_v54  ;;  %vm26_vm2 = vcmask 523264   ;;  %v404_v9 = vmov 0.0  }
  0x10   :  { %352 = vmatmul.msk.bf16.vlgmr.msra.gmra.mxu1 %vm47_vm1, %v81_v23  ;;  %355 = vmatmul.msk.bf16.vlgmr.msra.gmra.mxu2 %vm47_vm1, %v114_v31  ;;  %v278_v62 = vpack.c.bf16 %v277_v56, %v277_v56  ;;  %v210_v63 = vcvt.s32.f32 %v209_v57  ;;  %v206_v4 = vadd.f32 %v362_v0, %v173_v61  ;;  %v207_v8 = vadd.f32 %v363_v3, %v174_v55 }
  0x11   :  { %358 = vmatmul.msk.bf16.vlgmr.msra.gmra.mxu3 %vm47_vm1, %v147_v51  ;;  %260 = vmatpush.bf16.msrb.mxu2 %v251_v59  ;;  %v179_v2 = vpack.c.bf16 %v178_v60, %v178_v60  ;;  %27 = vst.msk [vmem:[#allocation2] sm:$0xff] %vm26_vm2, %v404_v9  ;;  %v180_v19 = vpack.c.bf16 %v360_v52, %v359_v58 }
  0x12   :  { %v284_v5 = vsel %vm51_vm0, %v278_v62, 0  ;;  %v211_v6 = vmul.f32 %v446_v1, %v210_v63  ;;  %v239_v11 = vadd.f32 %v365_v7, %v206_v4  ;;  %28 = vst.msk [vmem:[#allocation2 + $0x8] sm:$0xff] %vm26_vm2, %v404_v9  ;;  %v368_v1 = vld [vmem:[%s548_s0 + $0x70] sm:$0xff]  ;;  %v240_v16 = vadd.f32 %v366_v13, %v207_v8 }
  0x13   :  { %v185_v10 = vsel %vm51_vm0, %v179_v2, 0  ;;  %293 = vmatpush.bf16.msrb.mxu3 %v284_v5  ;;  %v213_v21 = vpack.c.bf16 %v363_v3, %v362_v0  ;;  %v246_v22 = vpack.c.bf16 %v366_v13, %v365_v7  ;;  %v279_v23 = vpack.c.bf16 %v369_v18, %v368_v1  ;;  %v377_v5 = vld [vmem:[%s552_s4] ss:$0 sm:$0xff]  ;;  %s406_s4 = smov 128  }
  0x14   :  { %194 = vmatpush.bf16.msrb.mxu0 %v185_v10  ;;  %v212_v12 = vpack.c.bf16 %v211_v6, %v211_v6  ;;  %v272_v14 = vadd.f32 %v368_v1, %v239_v11  ;;  %v273_v20 = vadd.f32 %v369_v18, %v240_v16  ;;  %v35_v43 = vmul.f32 %v31_v37, %v30_v36 }
  0x16   :  { %v218_v15 = vsel %vm51_vm0, %v212_v12, 0  ;;  %v302_v17 = vsel %vm47_vm1, %v272_v14, 0.0  ;;  %v305_v24 = vsel %vm47_vm1, %v273_v20, 0.0  ;;  %v309_v49 = vperm.slane %v35_v43, 0 }
  0x17   :  { %227 = vmatpush.bf16.msrb.mxu1 %v218_v15  ;;  %303 = vadd.xlane.f32.xlu0 %v302_v17 }
  0x18   :  { %v36_v26 = vld [vmem:[#allocation2] sm:$0xff] }
  0x19   :  { %v37_v34 = vld [vmem:[#allocation2 + $0x8] sm:$0xff] }
  0x1e   :  { %361 = vmatmul.msk.bf16.vlgmr.msrb.gmra.mxu0 %vm47_vm1, %v180_v19 }
  0x1f   :  { %306 = vadd.xlane.f32.xlu0 %v305_v24 }
  0x20   :  { %364 = vmatmul.msk.bf16.vlgmr.msrb.gmra.mxu1 %vm47_vm1, %v213_v21  ;;  %367 = vmatmul.msk.bf16.vlgmr.msrb.gmra.mxu2 %vm47_vm1, %v246_v22 }
  0x21   :  { %371 = vmatmul.msk.bf16.vlgmr.msrb.gmra.mxu3 %vm47_vm1, %v279_v23 }
  0x8a   :  { %v304_v47 = vpop.xlane.xlu0 %303 }
  0x8b   :  { %v64_v25 = vpop.f32.mrf.mxu0  ;;  %v311_v56 = vmul.f32 %v309_v49, %v304_v47 }
  0x8c   :  { %v69_v28 = vadd.f32 %v64_v25, %v36_v26 }
  0x8d   :  { %v97_v27 = vpop.f32.mrf.mxu1 }
  0x8e   :  { %v102_v31 = vadd.f32 %v97_v27, %v69_v28 }
  0x92   :  { %v307_v61 = vpop.xlane.xlu0 %306 }
  0x93   :  { %v66_v29 = vpop.f32.mrf.mxu0  ;;  %v130_v30 = vpop.f32.mrf.mxu2  ;;  %v312_v2 = vmul.f32 %v309_v49, %v307_v61 }
  0x94   :  { %v163_v32 = vpop.f32.mrf.mxu3  ;;  %v135_v35 = vadd.f32 %v130_v30, %v102_v31  ;;  %v70_v38 = vadd.f32 %v66_v29, %v37_v34 }
  0x95   :  { %v99_v33 = vpop.f32.mrf.mxu1 }
  0x96   :  { %v168_v41 = vadd.f32 %v163_v32, %v135_v35  ;;  %v103_v45 = vadd.f32 %v99_v33, %v70_v38 }
  0x9b   :  { %v132_v39 = vpop.f32.mrf.mxu2  ;;  %v196_v40 = vpop.f32.mrf.mxu0 }
  0x9c   :  { %v165_v42 = vpop.f32.mrf.mxu3  ;;  %v201_v46 = vadd.f32 %v196_v40, %v168_v41  ;;  %v136_v48 = vadd.f32 %v132_v39, %v103_v45 }
  0x9d   :  { %v229_v44 = vpop.f32.mrf.mxu1 }
  0x9e   :  { %v234_v50 = vadd.f32 %v229_v44, %v201_v46  ;;  %v169_v53 = vadd.f32 %v165_v42, %v136_v48 }
  0xa3   :  { %v198_v51 = vpop.f32.mrf.mxu0  ;;  %v262_v52 = vpop.f32.mrf.mxu2 }
  0xa4   :  { %v267_v54 = vadd.f32 %v262_v52, %v234_v50  ;;  %v295_v55 = vpop.f32.mrf.mxu3  ;;  %v202_v57 = vadd.f32 %v198_v51, %v169_v53 }
  0xa5   :  { %v231_v59 = vpop.f32.mrf.mxu1 }
  0xa6   :  { %v300_v58 = vadd.f32 %v295_v55, %v267_v54  ;;  %v235_v62 = vadd.f32 %v231_v59, %v202_v57 }
  0xa8   :  { %v313_v60 = vsub.f32 %v300_v58, %v311_v56 }
  0xaa   :  { %316 = vst.msk [vmem:[#allocation2] sm:$0xff] %vm26_vm2, %v313_v60 }
  0xab   :  { %v264_v63 = vpop.f32.mrf.mxu2 }
  0xac   :  { %v268_v0 = vadd.f32 %v264_v63, %v235_v62  ;;  %v297_v3 = vpop.f32.mrf.mxu3 }
  0xae   :  { %v301_v4 = vadd.f32 %v297_v3, %v268_v0 }
  0xb0   :  { %v314_v6 = vsub.f32 %v301_v4, %v312_v2 }
  0xb1   :  { %v321_v7 = vld [vmem:[#allocation2] sm:$0xff] }
  0xb2   :  { %317 = vst.msk [vmem:[#allocation2 + $0x8] sm:$0xff] %vm26_vm2, %v314_v6  ;;  %v327_v8 = vadd.f32 %v377_v5, %v321_v7 }
  0xb4   :  { %329 = vst.msk [vmem:[#allocation3] sm:$0xff] %vm26_vm2, %v327_v8 }
  0xb9   :  { %v322_v9 = vld [vmem:[#allocation2 + $0x8] sm:$0xff] }
  0xba   :  { %v328_v10 = vadd.f32 %v377_v5, %v322_v9 }
  0xbc   :  { %330 = vst.msk [vmem:[#allocation3 + $0x8] sm:$0xff] %vm26_vm2, %v328_v10 }
  0xbd   :  { %343 = dma.vmem_to_hbm [thread:$0]  %s336_s6, 256, %s338_s9, [#allocation4], %s406_s4, %s406_s4, %s407_s10  }
  0xbe   :  { %402 = dma.done.wait [#allocation4], 256  }
  0xbf   :  { %403 = vsyncadd [#allocation4], 4294967040 }
  0xc0   :  { %348 = vsyncpa [#allocation4], 1 }

</bundles_post_ra>
